<compile_context>
chip_gen: v7x
topology: tpu7x:2x2x1
jax: 0.10.0
libtpu: 0.0.40
codegen_flags: <defaults>
</compile_context>

<pallas_src>
import functools
from math import sqrt

import jax
import jax.numpy as jnp
from jax import lax
from jax.experimental import pallas as pl
from jax.experimental.pallas import tpu as pltpu

MIB = 1024 * 1024


# ---------------------------------------------------------------------------
# small helpers
# ---------------------------------------------------------------------------
def _full_spec(arr):
    """Whole-array block with a constant index map (1-D grid).

    The block index never changes across the grid, so the pipeline DMAs these
    blocks only once.  (pipeline_mode=pl.Buffered(1) would also reclaim the second
    buffer's VMEM, but is left off for lowering portability.)
    """
    nd = arr.ndim
    return pl.BlockSpec(arr.shape, lambda i, _nd=nd: (0,) * _nd)


def _mm(a, w_bf16):
    """MXU matmul: activation cast to bf16, weight pre-cast on host, f32 accumulation."""
    return jnp.dot(a.astype(jnp.bfloat16), w_bf16, preferred_element_type=jnp.float32)


def _bdot(a, b, ca, cb):
    """Batched (over leading axis) matmul with f32 accumulation."""
    return lax.dot_general(a, b, (((ca,), (cb,)), ((0,), (0,))),
                           preferred_element_type=jnp.float32)


# ---------------------------------------------------------------------------
# Kernel 1: GAttn (top-k masked MHSA) + Encoder residual + LeakyReLU + enc Linear.
# One grid step handles `batch_tile` batch elements; attention is vectorized over
# (head x batch-tile); weights arrive head-major and bf16 from the wrapper.
# ---------------------------------------------------------------------------
def _gattn_enc_kernel(x_ref, wqkv_ref, bqkv_ref, wo_ref, bo_ref, we_ref, be_ref,
                      y_ref, *opt_a_ref, n_heads, head_dim, top_k, alpha,
                      seq_len, batch_tile):
    a_ref = opt_a_ref[0] if opt_a_ref else None
    H, E, L, Bt = n_heads, head_dim, seq_len, batch_tile
    rows = Bt * L
    D = x_ref.shape[-1]
    scale = 1.0 / sqrt(E)

    x = x_ref[...].reshape(rows, D)                       # (Bt*L, D) f32

    # ---- fused Q/K/V projection: a single batched MXU pass over (H, D, 3E).
    xh = jnp.broadcast_to(x.astype(jnp.bfloat16)[None], (H, rows, D))
    qkv = _bdot(xh, wqkv_ref[...], 2, 1) + bqkv_ref[...]  # (H, Bt*L, 3E) f32
    q = jnp.maximum(qkv[..., :E], 0.0)                    # relu(Wq x + bq)
    k = qkv[..., E:2 * E]
    v = jnp.maximum(qkv[..., 2 * E:], 0.0)                # relu(Wv x + bv)

    # ---- attention vectorized over (head, batch-tile): shapes (H*Bt, L, *).
    # (the wrapper guarantees L % 8 == 0 whenever Bt > 1, so these reshapes are free)
    qb = q.reshape(H * Bt, L, E).astype(jnp.bfloat16)
    kb = k.reshape(H * Bt, L, E).astype(jnp.bfloat16)
    vb = v.reshape(H * Bt, L, E).astype(jnp.bfloat16)

    s = _bdot(qb, kb, 2, 2)                               # (H*Bt, L, L) f32 scores

    # threshold = top_k-th largest score counting multiplicity (== torch.topk()[0][...,-1]).
    lane_iota = lax.broadcasted_iota(jnp.int32, s.shape, 2)   # hoisted, built once
    removed = jnp.zeros(s.shape, dtype=jnp.bool_)
    thresh = jnp.full(s.shape[:-1] + (1,), -jnp.inf, jnp.float32)
    for _ in range(top_k):
        remaining = jnp.where(removed, -jnp.inf, s)
        thresh = jnp.max(remaining, axis=-1, keepdims=True)
        is_max = remaining == thresh
        first = jnp.min(jnp.where(is_max, lane_iota, L), axis=-1, keepdims=True)
        removed = removed | (lane_iota == first)
    # NOTE: mask-then-scale == torch's order only because scale > 0 (keeps -inf).
    s = jnp.where(s < thresh, -jnp.inf, s) * scale

    m = jnp.max(s, axis=-1, keepdims=True)
    e = jnp.exp(s - m)
    attn = e * pl.reciprocal(jnp.sum(e, axis=-1, keepdims=True), approx=True)

    if a_ref is not None:                                 # (Bt, H, L, L) output block
        attn4 = attn.reshape(H, Bt, L, L)
        for b in range(Bt):
            a_ref[b] = attn4[:, b].astype(a_ref.dtype)

    ctx = _bdot(attn.astype(jnp.bfloat16), vb, 2, 1)      # (H*Bt, L, E) f32
    ctx_h = ctx.reshape(H, rows, E)

    # ---- out-projection: per-head accumulation (no (H, rows, D) f32 intermediate).
    attn_out = jnp.dot(ctx_h[0].astype(jnp.bfloat16), wo_ref[0],
                       preferred_element_type=jnp.float32)
    for h in range(1, H):
        attn_out = attn_out + jnp.dot(ctx_h[h].astype(jnp.bfloat16), wo_ref[h],
                                      preferred_element_type=jnp.float32)
    attn_out = attn_out + bo_ref[...]                     # (Bt*L, D)

    y = x + attn_out                                      # Encoder residual
    y = jnp.where(y > 0, y, alpha * y)                    # LeakyReLU(alpha)
    y = _mm(y, we_ref[...]) + be_ref[...]                 # enc Linear
    y_ref[...] = y.reshape(Bt, L, D)


def _gattn_vmem_estimate(Bt, L, H, D, E, attn_bytes):
    rows = Bt * L
    est = 0
    est += 2 * rows * D * 4 * 2                           # x + y blocks (double-buffered)
    est += Bt * H * L * L * attn_bytes * 2                # attention-map block
    est += (3 * H * D * E + H * E * D + D * D) * 2 * 2    # bf16 weights x 2 buffers
    est += 5 * D * 4 * 2                                  # biases
    est += H * rows * D * 2                               # broadcast LHS (bf16)
    est += H * rows * 3 * E * 6                           # qkv f32 + bf16 copies
    est += H * Bt * L * L * 4 * 4                         # scores / top-k / exp / attn
    est += H * rows * E * 4 + rows * D * 8                # ctx + out accumulators
    return est


def _pick_batch_tile(B, L, H, D, E, attn_bytes, budget=14 * MIB):
    cands = [d for d in range(1, B + 1) if B % d == 0]
    # vectorized (H*Bt, L, E) reshapes need L % 8 == 0 unless Bt == 1
    legal = [bt for bt in cands if bt == 1 or L % 8 == 0]
    fitting = [bt for bt in legal
               if _gattn_vmem_estimate(bt, L, H, D, E, attn_bytes) <= budget] or [1]
    # prefer a grid of length >= 2 so v7x can use both TensorCores
    pref = [bt for bt in fitting if B // bt >= 2] or fitting
    return max(pref)


def gattn_enc(x, attn_params, enc_params, *, n_heads, top_k, alpha,
              return_attn=True, attn_dtype=jnp.float32, batch_tile=None):
    B, L, D = x.shape
    H = n_heads
    assert D % H == 0, "d_model must divide by n_heads"
    E = D // H
    assert 1 <= top_k <= L, "top_k must be in [1, L]"
    (wq, bq), (wk, bk), (wv, bv), (wo, bo) = attn_params
    we, be = enc_params

    # Host-side one-time head-major layout + bf16 cast (halves weight DMA / VMEM).
    def head_w(w):     # (D, H*E) -> (H, D, E)
        return jnp.transpose(w.reshape(D, H, E), (1, 0, 2))

    def head_b(b):     # (1, H*E) -> (H, 1, E)
        return jnp.transpose(b.reshape(1, H, E), (1, 0, 2))

    wqkv = jnp.concatenate([head_w(wq), head_w(wk), head_w(wv)], axis=-1)  # (H, D, 3E)
    wqkv = wqkv.astype(jnp.bfloat16)
    bqkv = jnp.concatenate([head_b(bq), head_b(bk), head_b(bv)], axis=-1)  # (H, 1, 3E) f32
    woh = wo.reshape(H, E, D).astype(jnp.bfloat16)        # rows h*E+e of wo -> woh[h, e, :]
    web = we.astype(jnp.bfloat16)

    attn_bytes = jnp.dtype(attn_dtype).itemsize if return_attn else 0
    if batch_tile is None:
        batch_tile = _pick_batch_tile(B, L, H, D, E, attn_bytes)
    Bt = batch_tile
    assert B % Bt == 0 and (Bt == 1 or L % 8 == 0)
    grid = (B // Bt,)

    kernel = functools.partial(_gattn_enc_kernel, n_heads=H, head_dim=E, top_k=top_k,
                               alpha=alpha, seq_len=L, batch_tile=Bt)

    weight_args = [wqkv, bqkv, woh, bo, web, be]
    in_specs = ([pl.BlockSpec((Bt, L, D), lambda i: (i, 0, 0))]
                + [_full_spec(a) for a in weight_args])
    y_shape = jax.ShapeDtypeStruct((B, L, D), jnp.float32)
    y_spec = pl.BlockSpec((Bt, L, D), lambda i: (i, 0, 0))

    vmem_est = _gattn_vmem_estimate(Bt, L, H, D, E, attn_bytes)
    cp = pltpu.CompilerParams(
        dimension_semantics=("parallel",),
        vmem_limit_bytes=int(min(max(2 * vmem_est, 32 * MIB), 120 * MIB)))

    if return_attn:
        a_shape = jax.ShapeDtypeStruct((B, H, L, L), attn_dtype)
        a_spec = pl.BlockSpec((Bt, H, L, L), lambda i: (i, 0, 0, 0))
        y, attn = pl.pallas_call(
            kernel, out_shape=(y_shape, a_shape), grid=grid,
            in_specs=in_specs, out_specs=(y_spec, a_spec), compiler_params=cp,
        )(x, *weight_args)
        return y, attn
    y = pl.pallas_call(
        kernel, out_shape=y_shape, grid=grid,
        in_specs=in_specs, out_specs=y_spec, compiler_params=cp,
    )(x, *weight_args)
    return y, None


# ---------------------------------------------------------------------------
# Kernel 2: PWattn — projections + patch-wise attention + residual out-proj,
# optionally fused with ELU + LayerNorm(d_ff).  Patch score/value reductions use
# MXU matmuls against constant bf16 pool / fold matrices; the score replication
# is a cheap jnp.repeat (no MXU work).  Rows are grid-tiled ("parallel").
# ---------------------------------------------------------------------------
def _pwattn_kernel(*refs, n_patches, seq_len, pred_len, fuse_elu_ln, ln_eps=1e-5):
    if fuse_elu_ln:
        (x_ref, wq_ref, bq_ref, wk_ref, bk_ref, wv_ref, bv_ref, wo_ref, bo_ref,
         pool_ref, fold_ref, g_ref, beta_ref, o_ref) = refs
    else:
        (x_ref, wq_ref, bq_ref, wk_ref, bk_ref, wv_ref, bv_ref, wo_ref, bo_ref,
         pool_ref, fold_ref, o_ref) = refs

    P = n_patches
    Lq, Ls = pred_len // P, seq_len // P
    inv_sqrt_p = 1.0 / sqrt(P)

    x = x_ref[...]                                                   # (TN, seq_len) f32
    query = jnp.maximum(_mm(x, wq_ref[...]) + bq_ref[...], 0.0)      # (TN, pred_len)
    keys = _mm(x, wk_ref[...]) + bk_ref[...]                         # (TN, seq_len)
    values = jnp.maximum(_mm(x, wv_ref[...]) + bv_ref[...], 0.0)     # (TN, seq_len)

    pool = pool_ref[...]        # (seq_len, Ls) bf16: pool[s*P+p, s] = 1
    fold = fold_ref[...]        # (seq_len, P)  bf16: fold[s*P+p, p] = 1

    # TODO(synk): group several l-iterations per MXU call (block-diag pool/fold) to
    # fill the 256-wide MXU on v6e/v7x; kept as a simple per-l loop here.
    parts = []
    for l in range(Lq):
        # patch-l query replicated across key patches -> lane-dense (TN, seq_len)
        ql = jnp.tile(query[:, l * P:(l + 1) * P], (1, Ls))
        sc = _mm(ql * keys, pool) * inv_sqrt_p                       # (TN, Ls) scores
        m = jnp.max(sc, axis=-1, keepdims=True)
        e = jnp.exp(sc - m)
        a = e * pl.reciprocal(jnp.sum(e, axis=-1, keepdims=True), approx=True)
        arep = jnp.repeat(a, P, axis=-1)                             # pure replication (no MXU)
        parts.append(_mm(arep * values, fold))                       # (TN, P)
    v_all = jnp.concatenate(parts, axis=1)                           # (TN, pred_len)

    out = query + _mm(v_all, wo_ref[...]) + bo_ref[...]              # (TN, pred_len)

    if fuse_elu_ln:
        e2 = jnp.where(out > 0, out, jnp.exp(jnp.minimum(out, 0.0)) - 1.0)   # ELU
        mu = jnp.mean(e2, axis=-1, keepdims=True)
        var = jnp.mean(jnp.square(e2 - mu), axis=-1, keepdims=True)
        out = (e2 - mu) * lax.rsqrt(var + ln_eps) * g_ref[...] + beta_ref[...]
    o_ref[...] = out


def _patch_mats(seq_len, n_patches):
    P = n_patches
    Ls = seq_len // P
    j = jnp.arange(seq_len)
    pool = (j[:, None] // P == jnp.arange(Ls)[None, :]).astype(jnp.bfloat16)
    fold = (j[:, None] % P == jnp.arange(P)[None, :]).astype(jnp.bfloat16)
    return pool, fold


def _pwattn_vmem_estimate(TN, seq_len, pred_len, w_bytes):
    est = 0
    est += TN * seq_len * 4 * 2        # x block (double-buffered)
    est += TN * pred_len * 4 * 2       # out block (double-buffered)
    est += w_bytes * 2                 # bf16 weights + pool/fold, 2 buffers
    est += TN * pred_len * 4 * 3       # query, v_all, epilogue temps
    est += TN * seq_len * 4 * 5        # keys, values, per-l temporaries
    return est


def _pick_row_tile(N, seq_len, pred_len, w_bytes, budget=16 * MIB):
    cands = [t for t in range(8, min(N, 1024) + 1, 8) if N % t == 0]
    if not cands:
        return N                       # full-array block is always legal
    fitting = [t for t in cands
               if _pwattn_vmem_estimate(t, seq_len, pred_len, w_bytes) <= budget] \
        or [min(cands)]
    pref = [t for t in fitting if N // t >= 2] or fitting      # grid >= 2 for v7x
    return max(pref)


def pwattn(x, params, *, n_patches, norm=None, row_tile=None):
    N, seq_len = x.shape
    (wq, bq), (wk, bk), (wv, bv), (wo, bo) = params
    pred_len = wq.shape[1]
    assert seq_len % n_patches == 0 and pred_len % n_patches == 0
    pool, fold = _patch_mats(seq_len, n_patches)
    fuse = norm is not None

    # Host-side bf16 cast of every streamed matrix (halves weight DMA + VMEM).
    wqb, wkb, wvb, wob = (w.astype(jnp.bfloat16) for w in (wq, wk, wv, wo))
    w_bytes = (wq.size + wk.size + wv.size + wo.size + pool.size + fold.size) * 2

    if row_tile is None:
        row_tile = _pick_row_tile(N, seq_len, pred_len, w_bytes)
    TN = row_tile
    assert TN == N or (N % TN == 0 and TN % 8 == 0)
    grid = (N // TN,)

    kernel = functools.partial(_pwattn_kernel, n_patches=n_patches,
                               seq_len=seq_len, pred_len=pred_len, fuse_elu_ln=fuse)

    args = [x, wqb, bq, wkb, bk, wvb, bv, wob, bo, pool, fold]
    in_specs = [pl.BlockSpec((TN, seq_len), lambda i: (i, 0))] + \
               [_full_spec(a) for a in args[1:]]
    if fuse:
        gamma, beta = norm
        args += [gamma, beta]
        in_specs += [_full_spec(gamma), _full_spec(beta)]

    vmem_est = _pwattn_vmem_estimate(TN, seq_len, pred_len, w_bytes)
    return pl.pallas_call(
        kernel,
        out_shape=jax.ShapeDtypeStruct((N, pred_len), jnp.float32),
        grid=grid,
        in_specs=in_specs,
        out_specs=pl.BlockSpec((TN, pred_len), lambda i: (i, 0)),
        compiler_params=pltpu.CompilerParams(
            dimension_semantics=("parallel",),
            vmem_limit_bytes=int(min(max(2 * vmem_est, 32 * MIB), 120 * MIB))),
    )(*args)


# ---------------------------------------------------------------------------
# GFAN forward (glue in plain JAX; hot paths in the kernels above)
# ---------------------------------------------------------------------------
def gfan_forward(x, n_vars, params, *, n_heads, top_k, alpha, n_patches,
                 return_attn=True, attn_dtype=jnp.float32):
    y, attn = gattn_enc(x, params["attn"], params["enc"], n_heads=n_heads,
                        top_k=top_k, alpha=alpha, return_attn=return_attn,
                        attn_dtype=attn_dtype)
    B, L, D = y.shape
    y = y.reshape(B * L, D)
    # ff1 is fused with ELU + LayerNorm(d_ff); dropout(p=0) is identity.
    y = pwattn(y, params["ff1"], n_patches=n_patches,
               norm=(params["norm2_g"], params["norm2_b"]))
    y = pwattn(y, params["ff2"], n_patches=n_patches)     # (B*L, d_model)
    y = y.reshape(-1, n_vars, y.shape[-1])
    return y, attn


# ---------------------------------------------------------------------------
# Deterministic parameter init (weights stored as (in, out); bias as (1, out))
# ---------------------------------------------------------------------------
def linear_params(key, d_in, d_out):
    kw, kb = jax.random.split(key)
    w = jax.random.normal(kw, (d_in, d_out), jnp.float32) * (1.0 / sqrt(d_in))
    b = 0.01 * jax.random.normal(kb, (1, d_out), jnp.float32)
    return w, b


def init_params(key, d_model, d_ff):
    keys = jax.random.split(key, 13)
    return {
        "attn": [linear_params(keys[0], d_model, d_model),   # query_projection
                 linear_params(keys[1], d_model, d_model),   # key_projection
                 linear_params(keys[2], d_model, d_model),   # value_projection
                 linear_params(keys[3], d_model, d_model)],  # out_projection
        "enc": linear_params(keys[4], d_model, d_model),
        "ff1": [linear_params(keys[5], d_model, d_ff),       # PWattn(d_model, d_ff)
                linear_params(keys[6], d_model, d_model),
                linear_params(keys[7], d_model, d_model),
                linear_params(keys[8], d_ff, d_ff)],
        "ff2": [linear_params(keys[9], d_ff, d_model),       # PWattn(d_ff, d_model)
                linear_params(keys[10], d_ff, d_ff),
                linear_params(keys[11], d_ff, d_ff),
                linear_params(keys[12], d_model, d_model)],
        "norm2_g": jnp.ones((1, d_ff), jnp.float32),
        "norm2_b": jnp.zeros((1, d_ff), jnp.float32),
    }


if __name__ == "__main__":
    B, L = 2, 8
    d_model, d_ff = 32, 64
    n_heads, n_patches, top_k = 4, 8, 2
    alpha = 0.5
    n_vars = 8   # must divide B*L

    key = jax.random.PRNGKey(0)
    kx, kp = jax.random.split(key)
    x = jax.random.normal(kx, (B, L, d_model), jnp.float32)
    params = init_params(kp, d_model, d_ff)

    y, attn = gfan_forward(x, n_vars, params, n_heads=n_heads, top_k=top_k,
                           alpha=alpha, n_patches=n_patches)
    jax.block_until_ready((y, attn))
    assert y.shape == (B * L // n_vars, n_vars, d_model)
    assert attn.shape == (B, n_heads, L, L)
    assert bool(jnp.all(jnp.isfinite(y))) and bool(jnp.all(jnp.isfinite(attn)))
    print("KERNEL_OK")
</pallas_src>

<mosaic_0001>
module attributes {stable_mosaic.version = 11 : i64} {
  func.func @_gattn_enc_kernel(%arg0: i32, %arg1: memref<1x8x32xf32, #tpu.memory_space<vmem>>, %arg2: memref<4x32x24xbf16, #tpu.memory_space<vmem>>, %arg3: memref<4x1x24xf32, #tpu.memory_space<vmem>>, %arg4: memref<4x8x32xbf16, #tpu.memory_space<vmem>>, %arg5: memref<1x32xf32, #tpu.memory_space<vmem>>, %arg6: memref<32x32xbf16, #tpu.memory_space<vmem>>, %arg7: memref<1x32xf32, #tpu.memory_space<vmem>>, %arg8: memref<1x8x32xf32, #tpu.memory_space<vmem>>, %arg9: memref<1x4x8x8xf32, #tpu.memory_space<vmem>>) attributes {dimension_semantics = [#tpu.dimension_semantics<parallel>], iteration_bounds = array<i64: 2>, scalar_prefetch = 0 : i64, scratch_operands = 0 : i64, tpu.core_type = #tpu.core_type<tc>, window_params = [{transform_indices = @transform_0, window_bounds = array<i64: 1, 8, 32>}, {pipeline_mode = #tpu.pipeline_mode<synchronous>, transform_indices = @transform_1, window_bounds = array<i64: 4, 32, 24>}, {pipeline_mode = #tpu.pipeline_mode<synchronous>, transform_indices = @transform_2, window_bounds = array<i64: 4, 1, 24>}, {pipeline_mode = #tpu.pipeline_mode<synchronous>, transform_indices = @transform_3, window_bounds = array<i64: 4, 8, 32>}, {pipeline_mode = #tpu.pipeline_mode<synchronous>, transform_indices = @transform_4, window_bounds = array<i64: 1, 32>}, {pipeline_mode = #tpu.pipeline_mode<synchronous>, transform_indices = @transform_5, window_bounds = array<i64: 32, 32>}, {pipeline_mode = #tpu.pipeline_mode<synchronous>, transform_indices = @transform_6, window_bounds = array<i64: 1, 32>}, {transform_indices = @transform_7, window_bounds = array<i64: 1, 8, 32>}, {transform_indices = @transform_8, window_bounds = array<i64: 1, 4, 8, 8>}]} {
    %c0 = arith.constant 0 : index
    %c0_0 = arith.constant 0 : index
    %c0_1 = arith.constant 0 : index
    %0 = vector.load %arg1[%c0, %c0_0, %c0_1] : memref<1x8x32xf32, #tpu.memory_space<vmem>>, vector<1x8x32xf32>
    %1 = vector.shape_cast %0 : vector<1x8x32xf32> to vector<8x32xf32>
    %2 = arith.truncf %1 : vector<8x32xf32> to vector<8x32xbf16>
    %3 = vector.shape_cast %2 : vector<8x32xbf16> to vector<1x8x32xbf16>
    %4 = vector.shape_cast %3 : vector<1x8x32xbf16> to vector<1x8x32xbf16>
    %5 = vector.broadcast %4 : vector<1x8x32xbf16> to vector<4x8x32xbf16>
    %c0_2 = arith.constant 0 : index
    %c0_3 = arith.constant 0 : index
    %c0_4 = arith.constant 0 : index
    %6 = vector.load %arg2[%c0_2, %c0_3, %c0_4] : memref<4x32x24xbf16, #tpu.memory_space<vmem>>, vector<4x32x24xbf16>
    %cst = arith.constant dense<0.000000e+00> : vector<4x8x24xf32>
    %7 = tpu.matmul %5, %6, %cst {dimension_numbers = #tpu.dot_dimension_numbers<[2], [1], [1], [2], [0, 0, 0, 1, 1, 2], [0], [0]>} : vector<4x8x32xbf16>, vector<4x32x24xbf16>, vector<4x8x24xf32> -> vector<4x8x24xf32>
    %c0_5 = arith.constant 0 : index
    %c0_6 = arith.constant 0 : index
    %c0_7 = arith.constant 0 : index
    %8 = vector.load %arg3[%c0_5, %c0_6, %c0_7] : memref<4x1x24xf32, #tpu.memory_space<vmem>>, vector<4x1x24xf32>
    %9 = vector.broadcast %8 : vector<4x1x24xf32> to vector<4x8x24xf32>
    %10 = arith.addf %7, %9 : vector<4x8x24xf32>
    %11 = vector.extract_strided_slice %10 {offsets = [0, 0, 0], sizes = [4, 8, 8], strides = [1, 1, 1]} : vector<4x8x24xf32> to vector<4x8x8xf32>
    %cst_8 = arith.constant 0.000000e+00 : f32
    %12 = vector.broadcast %cst_8 : f32 to vector<4x8x8xf32>
    %13 = arith.maximumf %11, %12 : vector<4x8x8xf32>
    %14 = vector.extract_strided_slice %10 {offsets = [0, 0, 8], sizes = [4, 8, 8], strides = [1, 1, 1]} : vector<4x8x24xf32> to vector<4x8x8xf32>
    %15 = vector.extract_strided_slice %10 {offsets = [0, 0, 16], sizes = [4, 8, 8], strides = [1, 1, 1]} : vector<4x8x24xf32> to vector<4x8x8xf32>
    %cst_9 = arith.constant 0.000000e+00 : f32
    %16 = vector.broadcast %cst_9 : f32 to vector<4x8x8xf32>
    %17 = arith.maximumf %15, %16 : vector<4x8x8xf32>
    %18 = arith.truncf %13 : vector<4x8x8xf32> to vector<4x8x8xbf16>
    %19 = arith.truncf %14 : vector<4x8x8xf32> to vector<4x8x8xbf16>
    %20 = arith.truncf %17 : vector<4x8x8xf32> to vector<4x8x8xbf16>
    %cst_10 = arith.constant dense<0.000000e+00> : vector<4x8x8xf32>
    %21 = tpu.matmul %18, %19, %cst_10 {dimension_numbers = #tpu.dot_dimension_numbers<[2], [2], [1], [1], [0, 0, 0, 1, 1, 1], [0], [0]>} : vector<4x8x8xbf16>, vector<4x8x8xbf16>, vector<4x8x8xf32> -> vector<4x8x8xf32>
    %22 = tpu.iota {dimensions = array<i32: 2>} : vector<4x8x8xi32>
    %false = arith.constant false
    %23 = vector.broadcast %false : i1 to vector<4x8x8xi1>
    %cst_11 = arith.constant 0xFF800000 : f32
    %24 = vector.broadcast %cst_11 : f32 to vector<4x8x8xf32>
    %25 = arith.select %23, %24, %21 : vector<4x8x8xi1>, vector<4x8x8xf32>
    %cst_12 = arith.constant dense<0xFF800000> : vector<4x8xf32>
    %26 = vector.multi_reduction <maximumf>, %25, %cst_12 [2] : vector<4x8x8xf32> to vector<4x8xf32>
    %27 = vector.shape_cast %26 : vector<4x8xf32> to vector<4x8x1xf32>
    %28 = vector.broadcast %27 : vector<4x8x1xf32> to vector<4x8x8xf32>
    %29 = arith.cmpf oeq, %25, %28 : vector<4x8x8xf32>
    %c8_i32 = arith.constant 8 : i32
    %30 = vector.broadcast %c8_i32 : i32 to vector<4x8x8xi32>
    %31 = arith.select %29, %22, %30 : vector<4x8x8xi1>, vector<4x8x8xi32>
    %cst_13 = arith.constant dense<2147483647> : vector<4x8xi32>
    %32 = vector.multi_reduction <minsi>, %31, %cst_13 [2] : vector<4x8x8xi32> to vector<4x8xi32>
    %33 = vector.shape_cast %32 : vector<4x8xi32> to vector<4x8x1xi32>
    %34 = vector.broadcast %33 : vector<4x8x1xi32> to vector<4x8x8xi32>
    %35 = arith.cmpi eq, %22, %34 : vector<4x8x8xi32>
    %36 = arith.ori %23, %35 : vector<4x8x8xi1>
    %cst_14 = arith.constant 0xFF800000 : f32
    %37 = vector.broadcast %cst_14 : f32 to vector<4x8x8xf32>
    %38 = arith.select %36, %37, %21 : vector<4x8x8xi1>, vector<4x8x8xf32>
    %cst_15 = arith.constant dense<0xFF800000> : vector<4x8xf32>
    %39 = vector.multi_reduction <maximumf>, %38, %cst_15 [2] : vector<4x8x8xf32> to vector<4x8xf32>
    %40 = vector.shape_cast %39 : vector<4x8xf32> to vector<4x8x1xf32>
    %41 = vector.broadcast %40 : vector<4x8x1xf32> to vector<4x8x8xf32>
    %42 = arith.cmpf olt, %21, %41 : vector<4x8x8xf32>
    %cst_16 = arith.constant 0xFF800000 : f32
    %43 = vector.broadcast %cst_16 : f32 to vector<4x8x8xf32>
    %44 = arith.select %42, %43, %21 : vector<4x8x8xi1>, vector<4x8x8xf32>
    %cst_17 = arith.constant 0.353553385 : f32
    %45 = vector.broadcast %cst_17 : f32 to vector<4x8x8xf32>
    %46 = arith.mulf %44, %45 : vector<4x8x8xf32>
    %cst_18 = arith.constant dense<0xFF800000> : vector<4x8xf32>
    %47 = vector.multi_reduction <maximumf>, %46, %cst_18 [2] : vector<4x8x8xf32> to vector<4x8xf32>
    %48 = vector.shape_cast %47 : vector<4x8xf32> to vector<4x8x1xf32>
    %49 = vector.broadcast %48 : vector<4x8x1xf32> to vector<4x8x8xf32>
    %50 = arith.subf %46, %49 : vector<4x8x8xf32>
    %51 = math.exp %50 : vector<4x8x8xf32>
    %cst_19 = arith.constant dense<0.000000e+00> : vector<4x8xf32>
    %52 = vector.multi_reduction <add>, %51, %cst_19 [2] : vector<4x8x8xf32> to vector<4x8xf32>
    %53 = vector.shape_cast %52 : vector<4x8xf32> to vector<4x8x1xf32>
    %54 = tpu.reciprocal %53 {approx = true} : vector<4x8x1xf32> -> vector<4x8x1xf32>
    %55 = vector.broadcast %54 : vector<4x8x1xf32> to vector<4x8x8xf32>
    %56 = arith.mulf %51, %55 : vector<4x8x8xf32>
    %57 = vector.shape_cast %56 : vector<4x8x8xf32> to vector<4x1x8x8xf32>
    %58 = vector.shape_cast %57 : vector<4x1x8x8xf32> to vector<4x8x8xf32>
    %c0_20 = arith.constant 0 : index
    %c0_21 = arith.constant 0 : index
    %c0_22 = arith.constant 0 : index
    %c0_23 = arith.constant 0 : index
    %59 = vector.load %arg9[%c0_20, %c0_21, %c0_22, %c0_23] : memref<1x4x8x8xf32, #tpu.memory_space<vmem>>, vector<1x4x8x8xf32>
    %60 = vector.shape_cast %59 : vector<1x4x8x8xf32> to vector<4x8x8xf32>
    %61 = vector.shape_cast %58 : vector<4x8x8xf32> to vector<1x4x8x8xf32>
    tpu.vector_store %arg9[%c0_20, %c0_21, %c0_22, %c0_23], %61 {strides = array<i32>} : memref<1x4x8x8xf32, #tpu.memory_space<vmem>>, vector<1x4x8x8xf32>,
    %62 = arith.truncf %56 : vector<4x8x8xf32> to vector<4x8x8xbf16>
    %cst_24 = arith.constant dense<0.000000e+00> : vector<4x8x8xf32>
    %63 = tpu.matmul %62, %20, %cst_24 {dimension_numbers = #tpu.dot_dimension_numbers<[2], [1], [1], [2], [0, 0, 0, 1, 1, 2], [0], [0]>} : vector<4x8x8xbf16>, vector<4x8x8xbf16>, vector<4x8x8xf32> -> vector<4x8x8xf32>
    %64 = vector.extract_strided_slice %63 {offsets = [0, 0, 0], sizes = [1, 8, 8], strides = [1, 1, 1]} : vector<4x8x8xf32> to vector<1x8x8xf32>
    %65 = vector.shape_cast %64 : vector<1x8x8xf32> to vector<8x8xf32>
    %66 = arith.truncf %65 : vector<8x8xf32> to vector<8x8xbf16>
    %c0_25 = arith.constant 0 : index
    %c0_26 = arith.constant 0 : index
    %c0_27 = arith.constant 0 : index
    %67 = vector.load %arg4[%c0_25, %c0_26, %c0_27] : memref<4x8x32xbf16, #tpu.memory_space<vmem>>, vector<1x8x32xbf16>
    %68 = vector.shape_cast %67 : vector<1x8x32xbf16> to vector<8x32xbf16>
    %cst_28 = arith.constant dense<0.000000e+00> : vector<8x32xf32>
    %69 = tpu.matmul %66, %68, %cst_28 {dimension_numbers = #tpu.dot_dimension_numbers<[1], [0], [0], [1], [0, 0, 1, 1], [], []>} : vector<8x8xbf16>, vector<8x32xbf16>, vector<8x32xf32> -> vector<8x32xf32>
    %70 = vector.extract_strided_slice %63 {offsets = [1, 0, 0], sizes = [1, 8, 8], strides = [1, 1, 1]} : vector<4x8x8xf32> to vector<1x8x8xf32>
    %71 = vector.shape_cast %70 : vector<1x8x8xf32> to vector<8x8xf32>
    %72 = arith.truncf %71 : vector<8x8xf32> to vector<8x8xbf16>
    %c1 = arith.constant 1 : index
    %c0_29 = arith.constant 0 : index
    %c0_30 = arith.constant 0 : index
    %73 = vector.load %arg4[%c1, %c0_29, %c0_30] : memref<4x8x32xbf16, #tpu.memory_space<vmem>>, vector<1x8x32xbf16>
    %74 = vector.shape_cast %73 : vector<1x8x32xbf16> to vector<8x32xbf16>
    %cst_31 = arith.constant dense<0.000000e+00> : vector<8x32xf32>
    %75 = tpu.matmul %72, %74, %cst_31 {dimension_numbers = #tpu.dot_dimension_numbers<[1], [0], [0], [1], [0, 0, 1, 1], [], []>} : vector<8x8xbf16>, vector<8x32xbf16>, vector<8x32xf32> -> vector<8x32xf32>
    %76 = arith.addf %69, %75 : vector<8x32xf32>
    %77 = vector.extract_strided_slice %63 {offsets = [2, 0, 0], sizes = [1, 8, 8], strides = [1, 1, 1]} : vector<4x8x8xf32> to vector<1x8x8xf32>
    %78 = vector.shape_cast %77 : vector<1x8x8xf32> to vector<8x8xf32>
    %79 = arith.truncf %78 : vector<8x8xf32> to vector<8x8xbf16>
    %c2 = arith.constant 2 : index
    %c0_32 = arith.constant 0 : index
    %c0_33 = arith.constant 0 : index
    %80 = vector.load %arg4[%c2, %c0_32, %c0_33] : memref<4x8x32xbf16, #tpu.memory_space<vmem>>, vector<1x8x32xbf16>
    %81 = vector.shape_cast %80 : vector<1x8x32xbf16> to vector<8x32xbf16>
    %cst_34 = arith.constant dense<0.000000e+00> : vector<8x32xf32>
    %82 = tpu.matmul %79, %81, %cst_34 {dimension_numbers = #tpu.dot_dimension_numbers<[1], [0], [0], [1], [0, 0, 1, 1], [], []>} : vector<8x8xbf16>, vector<8x32xbf16>, vector<8x32xf32> -> vector<8x32xf32>
    %83 = arith.addf %76, %82 : vector<8x32xf32>
    %84 = vector.extract_strided_slice %63 {offsets = [3, 0, 0], sizes = [1, 8, 8], strides = [1, 1, 1]} : vector<4x8x8xf32> to vector<1x8x8xf32>
    %85 = vector.shape_cast %84 : vector<1x8x8xf32> to vector<8x8xf32>
    %86 = arith.truncf %85 : vector<8x8xf32> to vector<8x8xbf16>
    %c3 = arith.constant 3 : index
    %c0_35 = arith.constant 0 : index
    %c0_36 = arith.constant 0 : index
    %87 = vector.load %arg4[%c3, %c0_35, %c0_36] : memref<4x8x32xbf16, #tpu.memory_space<vmem>>, vector<1x8x32xbf16>
    %88 = vector.shape_cast %87 : vector<1x8x32xbf16> to vector<8x32xbf16>
    %cst_37 = arith.constant dense<0.000000e+00> : vector<8x32xf32>
    %89 = tpu.matmul %86, %88, %cst_37 {dimension_numbers = #tpu.dot_dimension_numbers<[1], [0], [0], [1], [0, 0, 1, 1], [], []>} : vector<8x8xbf16>, vector<8x32xbf16>, vector<8x32xf32> -> vector<8x32xf32>
    %90 = arith.addf %83, %89 : vector<8x32xf32>
    %c0_38 = arith.constant 0 : index
    %c0_39 = arith.constant 0 : index
    %91 = vector.load %arg5[%c0_38, %c0_39] : memref<1x32xf32, #tpu.memory_space<vmem>>, vector<1x32xf32>
    %92 = vector.broadcast %91 : vector<1x32xf32> to vector<8x32xf32>
    %93 = arith.addf %90, %92 : vector<8x32xf32>
    %94 = arith.addf %1, %93 : vector<8x32xf32>
    %cst_40 = arith.constant 0.000000e+00 : f32
    %95 = vector.broadcast %cst_40 : f32 to vector<8x32xf32>
    %96 = arith.cmpf ogt, %94, %95 : vector<8x32xf32>
    %cst_41 = arith.constant 5.000000e-01 : f32
    %97 = vector.broadcast %cst_41 : f32 to vector<8x32xf32>
    %98 = arith.mulf %97, %94 : vector<8x32xf32>
    %99 = arith.select %96, %94, %98 : vector<8x32xi1>, vector<8x32xf32>
    %c0_42 = arith.constant 0 : index
    %c0_43 = arith.constant 0 : index
    %100 = vector.load %arg6[%c0_42, %c0_43] : memref<32x32xbf16, #tpu.memory_space<vmem>>, vector<32x32xbf16>
    %101 = arith.truncf %99 : vector<8x32xf32> to vector<8x32xbf16>
    %cst_44 = arith.constant dense<0.000000e+00> : vector<8x32xf32>
    %102 = tpu.matmul %101, %100, %cst_44 {dimension_numbers = #tpu.dot_dimension_numbers<[1], [0], [0], [1], [0, 0, 1, 1], [], []>} : vector<8x32xbf16>, vector<32x32xbf16>, vector<8x32xf32> -> vector<8x32xf32>
    %c0_45 = arith.constant 0 : index
    %c0_46 = arith.constant 0 : index
    %103 = vector.load %arg7[%c0_45, %c0_46] : memref<1x32xf32, #tpu.memory_space<vmem>>, vector<1x32xf32>
    %104 = vector.broadcast %103 : vector<1x32xf32> to vector<8x32xf32>
    %105 = arith.addf %102, %104 : vector<8x32xf32>
    %106 = vector.shape_cast %105 : vector<8x32xf32> to vector<1x8x32xf32>
    %c0_47 = arith.constant 0 : index
    %c0_48 = arith.constant 0 : index
    %c0_49 = arith.constant 0 : index
    %107 = vector.load %arg8[%c0_47, %c0_48, %c0_49] : memref<1x8x32xf32, #tpu.memory_space<vmem>>, vector<1x8x32xf32>
    tpu.vector_store %arg8[%c0_47, %c0_48, %c0_49], %106 {strides = array<i32>} : memref<1x8x32xf32, #tpu.memory_space<vmem>>, vector<1x8x32xf32>,
    return
  }
  func.func @transform_0(%arg0: i32) -> (i32, i32, i32) {
    %c0_i32 = arith.constant 0 : i32
    %c0_i32_0 = arith.constant 0 : i32
    %c0_i32_1 = arith.constant 0 : i32
    return %arg0, %c0_i32, %c0_i32_0 : i32, i32, i32
  }
  func.func @transform_1(%arg0: i32) -> (i32, i32, i32) {
    %c0_i32 = arith.constant 0 : i32
    %c0_i32_0 = arith.constant 0 : i32
    %c0_i32_1 = arith.constant 0 : i32
    %c0_i32_2 = arith.constant 0 : i32
    return %c0_i32, %c0_i32_0, %c0_i32_1 : i32, i32, i32
  }
  func.func @transform_2(%arg0: i32) -> (i32, i32, i32) {
    %c0_i32 = arith.constant 0 : i32
    %c0_i32_0 = arith.constant 0 : i32
    %c0_i32_1 = arith.constant 0 : i32
    %c0_i32_2 = arith.constant 0 : i32
    return %c0_i32, %c0_i32_0, %c0_i32_1 : i32, i32, i32
  }
  func.func @transform_3(%arg0: i32) -> (i32, i32, i32) {
    %c0_i32 = arith.constant 0 : i32
    %c0_i32_0 = arith.constant 0 : i32
    %c0_i32_1 = arith.constant 0 : i32
    %c0_i32_2 = arith.constant 0 : i32
    return %c0_i32, %c0_i32_0, %c0_i32_1 : i32, i32, i32
  }
  func.func @transform_4(%arg0: i32) -> (i32, i32) {
    %c0_i32 = arith.constant 0 : i32
    %c0_i32_0 = arith.constant 0 : i32
    %c0_i32_1 = arith.constant 0 : i32
    return %c0_i32, %c0_i32_0 : i32, i32
  }
  func.func @transform_5(%arg0: i32) -> (i32, i32) {
    %c0_i32 = arith.constant 0 : i32
    %c0_i32_0 = arith.constant 0 : i32
    %c0_i32_1 = arith.constant 0 : i32
    return %c0_i32, %c0_i32_0 : i32, i32
  }
  func.func @transform_6(%arg0: i32) -> (i32, i32) {
    %c0_i32 = arith.constant 0 : i32
    %c0_i32_0 = arith.constant 0 : i32
    %c0_i32_1 = arith.constant 0 : i32
    return %c0_i32, %c0_i32_0 : i32, i32
  }
  func.func @transform_7(%arg0: i32) -> (i32, i32, i32) {
    %c0_i32 = arith.constant 0 : i32
    %c0_i32_0 = arith.constant 0 : i32
    %c0_i32_1 = arith.constant 0 : i32
    return %arg0, %c0_i32, %c0_i32_0 : i32, i32, i32
  }
  func.func @transform_8(%arg0: i32) -> (i32, i32, i32, i32) {
    %c0_i32 = arith.constant 0 : i32
    %c0_i32_0 = arith.constant 0 : i32
    %c0_i32_1 = arith.constant 0 : i32
    %c0_i32_2 = arith.constant 0 : i32
    return %arg0, %c0_i32, %c0_i32_0, %c0_i32_1 : i32, i32, i32, i32
  }
}

</mosaic_0001>

<bundles_post_ra>
// kernel: tpu_custom_call.1
= control target key start
LH: loop header
LB: loop body
LE: loop exit
PB: predicated region body
PF: predicated region fallthrough
CT: control target
= control target key end

     0   :  { %s2350_s0 = inlined_call_operand.vmem [shape: f32[2,8,32], index: 0, kind: input, shape index: {}]   ;;  %s2351_s1 = inlined_call_operand.vmem [shape: bf16[4,32,24], index: 1, kind: input, shape index: {}]   ;;  %s2352_s2 = inlined_call_operand.vmem [shape: f32[4,1,24], index: 2, kind: input, shape index: {}]   ;;  %s2353_s3 = inlined_call_operand.vmem [shape: bf16[4,8,32], index: 3, kind: input, shape index: {}]   ;;  %s2354_s4 = inlined_call_operand.vmem [shape: f32[1,32], index: 4, kind: input, shape index: {}]   ;;  %s2355_s5 = inlined_call_operand.vmem [shape: bf16[32,32], index: 5, kind: input, shape index: {}]   ;;  %s2356_s6 = inlined_call_operand.vmem [shape: f32[1,32], index: 6, kind: input, shape index: {}]   ;;  %s2357_s7 = inlined_call_operand.hbm [shape: f32[2,8,32], index: 7, kind: output, shape index: {0}]   ;;  %s2358_s8 = inlined_call_operand.hbm [shape: f32[2,4,8,8], index: 8, kind: output, shape index: {1}]  }
   0x1   :  { %2359 = sst [smem:[#allocation8_spill]] %s2350_s0 }
   0x2   :  { %2360 = sst [smem:[#allocation9_spill]] %s2351_s1 }
   0x3   :  { %14 = vsyncpa [#allocation3], 0 }
   0x4   :  { %16 = vsyncpa [#allocation3 + $0x1], 0 }
   0x5   :  { %17 = vsyncpa [#allocation5], 0 }
   0x6   :  { %19 = vsyncpa [#allocation5 + $0x1], 0  ;;  %s1973_s27 = smov 0   ;;  %s1975_s28 = smov 0  }
   0x7   :  { %s1977_s29 = smov 0   ;;  %s1979_s30 = smov 0  }
   0x8 LB: > { %s1994_s9 = sadd.s32 4294967295, %s1918_s30   ;;  %s1546_s10 = sadd.s32 4294967294, %s1918_s30   ;;  %s1918_s30 = sphi %s1979_s30, %s2368_s30   ;;  %s1914_s29 = sphi %s1977_s29, %s2367_s29   ;;  %s1910_s28 = sphi %s1975_s28, %s2366_s28   ;;  %s1906_s27 = sphi %s1973_s27, %s2365_s27  }
   0x9   : > { %s1998_s11 = sadd.s32 1, %s1918_s30   ;;  %s184_s12 = sadd.s32 1, %s1914_s29 }
   0xa   : > { %s181_s13 = ssub.s32 %s1918_s30, %s1998_s11  ;;  %p194_p0 = scmp.ne.s32.totalorder %s1914_s29, %s1910_s28 }
   0xb   : > { %p182_p1 = scmp.eq.s32.totalorder %s181_s13, 0  ;;  %p195_p2 = scmp.eq.s32.totalorder %s1994_s9, 1 }
   0xc   : > { %p200_p3 = scmp.ne.s32.totalorder %s1910_s28, %s1906_s27  ;;  %p201_p4 = scmp.eq.s32.totalorder %s1546_s10, 1 }
   0xd   : > { %s2009_s14 = scalar_select %p182_p1, %s1914_s29, %s184_s12  }
   0xe   : > { %p2011_p5 = por %p195_p2, %p194_p0  ;;  %p2015_p6 = por %p201_p4, %p200_p3 }
   0xf   : > { %p1549_p7 = scmp.ge.s32.totalorder %s1918_s30, 1  ;;  %p270_p8 = scmp.lt.s32.totalorder %s1918_s30, 3 }
  0x11   : > { %p271_p9 = pnand %p1549_p7, %p270_p8 }
  0x12   : > { %s2363_s1 = sld [smem:[#allocation9_spill]] (!%p271_p9)  ;;  %v1920_v1 = vmov (!%p271_p9), 0.0   ;;  %vm1921_vm0 = vmmov (!%p271_p9), 0   ;;  %p308_p10 = scmp.lt.s32.totalorder (!%p271_p9), %s1994_s9, 1  ;;  %vm371_vm1 = vcmask (!%p271_p9), 261120   ;;  %vm586_vm2 = vcmask (!%p271_p9), 64512  }
  0x13   : > { %274 = sbr.rel (%p271_p9) target bundleno = 2169 (0x879), region = 48  ;;  %1636 = vmatprep.subr.bf16.mxu0 (!%p271_p9), %v1920_v1  ;;  %1644 = vmatprep.subr.bf16.mxu1 (!%p271_p9), %v1920_v1  ;;  %s2364_s0 = sld [smem:[#allocation8_spill]] (!%p271_p9)  ;;  %v1553_v11 = vld [vmem:[%s2352_s2] ss:$0 sm:$0xff] (!%p271_p9)  ;;  %v1554_v12 = vld [vmem:[%s2352_s2 + $0x1] ss:$0 sm:$0xff] (!%p271_p9) }
  0x14   : > { %1640 = vmatprep.mubr.msk.bf16.mxu0 (!%p271_p9), %vm1921_vm0, %v1920_v1  ;;  %1648 = vmatprep.mubr.msk.bf16.mxu1 (!%p271_p9), %vm1921_vm0, %v1920_v1  ;;  %v1555_v25 = vld [vmem:[%s2352_s2 + $0x2] ss:$0 sm:$0xff] (!%p271_p9)  ;;  %v1556_v26 = vld [vmem:[%s2352_s2 + $0x3] ss:$0 sm:$0xff] (!%p271_p9)  ;;  %s1923_s21 = smov (!%p271_p9), 112   ;;  %s2193_s22 = sand.u32 (!%p271_p9), 1, %s1910_s28  }
  0x15   : > { %s1551_s23 = sshll.u32 (!%p271_p9), %s2193_s22, 5  ;;  %s1426_s20 = scalar_lea.sflag (!%p271_p9), [#allocation5], %s2193_s22 }
  0x16   : > { %s2196_s24 = scalar_lea.vmem (!%p271_p9), [#allocation4], %s1551_s23  ;;  %s1924_s23 = smov (!%p271_p9), [#allocation4]  }
  0x17   : > { %s1452_s12 = sshll.u32 (!%p271_p9), %s2196_s24, 4  ;;  %s2267_s12 = int_to_ptr.vmem [resolvable:$true] %s1452_s12 }
  0x18   : > { %v1798_v0 = vld [vmem:[%s2363_s1] sm:$0xff] (!%p271_p9)   ;;  %v1799_v2 = vld [vmem:[%s2363_s1 + $0x10] sm:$0xff] (!%p271_p9)   ;;  %v1800_v3 = vld [vmem:[%s2363_s1 + $0x8] sm:$0xff] (!%p271_p9)  }
  0x19   : > { %1637 = vmatpush3.bf16.msra.mxu0 (!%p271_p9), %v1798_v0  ;;  %1645 = vmatpush3.bf16.msra.mxu1 (!%p271_p9), %v1799_v2  ;;  %v1801_v4 = vld [vmem:[%s2363_s1 + $0x18] sm:$0xff] (!%p271_p9)   ;;  %v1802_v5 = vld [vmem:[%s2363_s1 + $0x20] sm:$0xff] (!%p271_p9)   ;;  %v1803_v7 = vld [vmem:[%s2363_s1 + $0x30] sm:$0xff] (!%p271_p9)  }
  0x1a   : > { %1638 = vmatprep.subr.bf16.mxu0 %v1920_v1  ;;  %1646 = vmatprep.subr.bf16.mxu1 %v1920_v1  ;;  %s309_s25 = scalar_select %p308_p10, %s1994_s9, 1  ;;  %v1804_v9 = vld [vmem:[%s2363_s1 + $0x28] sm:$0xff]   ;;  %v1805_v10 = vld [vmem:[%s2363_s1 + $0x38] sm:$0xff]  }
  0x1c   : > { %s1552_s26 = sshll.u32 %s309_s25, 3  ;;  %s1828_s25 = sshll.u32 %s1924_s23, 4  ;;  %s1829_s25 = int_to_ptr.vmem [resolvable:$false] %s1828_s25 }
  0x1d   : > { %1639 = vmatpush3.bf16.msra.mxu0 %v1800_v3  ;;  %1647 = vmatpush3.bf16.msra.mxu1 %v1801_v4  ;;  %s311_s13 = scalar_lea.vmem %s2364_s0, %s1552_s26  ;;  %p1831_p0 = scmp.lt.s32.totalorder %s2267_s12, %s1829_s25 }
  0x1e   : > { %1652 = vmatprep.subr.bf16.mxu0 %v1920_v1  ;;  %v2050_v6 = vld [vmem:[%s311_s13] sm:$0xff]  ;;  %1660 = vmatprep.subr.bf16.mxu1 %v1920_v1  ;;  %s1922_s13 = smov 120  }
  0x1f   : > { %v314_v8 = vpack.c.bf16 %v2050_v6, %v2050_v6 }
  0x21   : > { %1641 = vmatmul.mubr.msk.bf16.vlgmr.msra.gmra.mrb[0].mxu0 %vm371_vm1, %v314_v8  ;;  %1649 = vmatmul.mubr.msk.bf16.vlgmr.msra.gmra.mrb[0].mxu1 %vm371_vm1, %v314_v8 }
  0x22   : > { %1653 = vmatpush3.bf16.msra.mxu0 %v1802_v5  ;;  %1661 = vmatpush3.bf16.msra.mxu1 %v1803_v7 }
  0x23   : > { %1654 = vmatprep.subr.bf16.mxu0 %v1920_v1  ;;  %1662 = vmatprep.subr.bf16.mxu1 %v1920_v1 }
  0x24   : > { %1656 = vmatprep.mubr.msk.bf16.mxu0 %vm1921_vm0, %v1920_v1  ;;  %1664 = vmatprep.mubr.msk.bf16.mxu1 %vm1921_vm0, %v1920_v1 }
  0x26   : > { %1655 = vmatpush3.bf16.msra.mxu0 %v1804_v9  ;;  %1663 = vmatpush3.bf16.msra.mxu1 %v1805_v10 }
  0x27   : > { %1668 = vmatprep.subr.bf16.mxu0 %v1920_v1  ;;  %1674 = vmatprep.subr.bf16.mxu1 %v1920_v1 }
  0x29   : > { %1657 = vmatmul.mubr.msk.bf16.vlgmr.msra.gmra.mrb[4].mxu0 %vm371_vm1, %v314_v8  ;;  %1665 = vmatmul.mubr.msk.bf16.vlgmr.msra.gmra.mrb[4].mxu1 %vm371_vm1, %v314_v8 }
  0x2a   : > { %1670 = vmatprep.mubr.msk.bf16.mxu0 %vm1921_vm0, %v1920_v1  ;;  %1676 = vmatprep.mubr.msk.bf16.mxu1 %vm1921_vm0, %v1920_v1 }
  0xf4   : > { %v409_v13 = vpop.f32.mrb[0].mxu0  ;;  %v461_v14 = vpop.f32.mrb[0].mxu1 }
  0xf5   : > { %v410_v15 = vadd.f32 %v1553_v11, %v409_v13  ;;  %v1642_v16 = vpop.f32.mrb[1].mxu0  ;;  %v462_v17 = vadd.f32 %v1554_v12, %v461_v14  ;;  %v1650_v18 = vpop.f32.mrb[1].mxu1  ;;  %v780_v13 = vlaneseq }
  0xf6   : > { %v412_v19 = vpop.f32.mrb[2].mxu0  ;;  %v464_v20 = vpop.f32.mrb[2].mxu1 }
  0xf7   : > { %v1643_v21 = vpop.f32.mrb[3].mxu0  ;;  %v1651_v22 = vpop.f32.mrb[3].mxu1  ;;  %v579_v23 = vpack.c.bf16 %v410_v15, %v410_v15  ;;  %v580_v24 = vpack.c.bf16 %v462_v17, %v462_v17  ;;  %v571_v41 = vmax.f32 %v410_v15, 0.0  ;;  %v572_v45 = vmax.f32 %v462_v17, 0.0 }
  0xf8   : > { %v2140_v14 = vand.u32 127, %v780_v13 }
  0xf9   : > { %584 = vrot.lane.b32.xlu0 %v579_v23, %s1922_s13  ;;  %v2095_v44 = vpack.c.bf16 %v571_v41, %v571_v41  ;;  %v2103_v48 = vpack.c.bf16 %v572_v45, %v572_v45 }
  0xfc   : > { %v513_v27 = vpop.f32.mrb[4].mxu0  ;;  %v565_v28 = vpop.f32.mrb[4].mxu1 }
  0xfd   : > { %v514_v29 = vadd.f32 %v1555_v25, %v513_v27  ;;  %v566_v30 = vadd.f32 %v1556_v26, %v565_v28  ;;  %634 = vrot.lane.b32.xlu0 %v580_v24, %s1922_s13  ;;  %v1658_v31 = vpop.f32.mrb[5].mxu0  ;;  %v1666_v32 = vpop.f32.mrb[5].mxu1 }
  0xfe   : > { %v516_v33 = vpop.f32.mrb[6].mxu0  ;;  %v568_v34 = vpop.f32.mrb[6].mxu1 }
  0xff   : > { %v1659_v35 = vpop.f32.mrb[7].mxu0  ;;  %v1667_v36 = vpop.f32.mrb[7].mxu1  ;;  %v581_v37 = vpack.c.bf16 %v514_v29, %v514_v29  ;;  %v582_v38 = vpack.c.bf16 %v566_v30, %v566_v30  ;;  %v573_v49 = vmax.f32 %v514_v29, 0.0  ;;  %v574_v53 = vmax.f32 %v566_v30, 0.0 }
 0x101   : > { %683 = vrot.lane.b32.xlu1 %v581_v37, %s1922_s13  ;;  %v2111_v52 = vpack.c.bf16 %v573_v49, %v573_v49  ;;  %v2118_v54 = vpack.c.bf16 %v574_v53, %v574_v53 }
 0x105   : > { %732 = vrot.lane.b32.xlu1 %v582_v38, %s1922_s13  ;;  %s1596_s13 = sshll.u32 %s1994_s9, 9 }
 0x106   : > { %s2272_s19 = scalar_lea.hbm %s2358_s8, %s1596_s13 }
 0x16b   : > { %v585_v39 = vpop.permute.xlu0 %584 }
 0x16c   : > { %v591_v40 = vsel %vm586_vm2, %v585_v39, 0 }
 0x16d   : > { %1669 = vmatpush3.bf16.xpose.msra.mxu0 %v591_v40 }
 0x16e   : > { %1680 = vmatprep.subr.bf16.mxu0 %v1920_v1 }
 0x16f   : > { %v635_v42 = vpop.permute.xlu0 %634 }
 0x170   : > { %v640_v43 = vsel %vm586_vm2, %v635_v42, 0 }
 0x171   : > { %1675 = vmatpush3.bf16.xpose.msra.mxu1 %v640_v43 }
 0x172   : > { %1686 = vmatprep.subr.bf16.mxu1 %v1920_v1 }
 0x173   : > { %v684_v46 = vpop.permute.xlu1 %683 }
 0x174   : > { %v689_v47 = vsel %vm586_vm2, %v684_v46, 0  ;;  %1671 = vmatmul.mubr.msk.bf16.vlgmr.msra.gmra.mrb[8].mxu0 %vm586_vm2, %v2095_v44 }
 0x175   : > { %1681 = vmatpush3.bf16.xpose.msra.mxu0 %v689_v47  ;;  %1682 = vmatprep.mubr.msk.bf16.mxu0 %vm1921_vm0, %v1920_v1 }
 0x176   : > { %1692 = vmatprep.subr.bf16.mxu0 %v1920_v1 }
 0x177   : > { %v733_v50 = vpop.permute.xlu1 %732 }
 0x178   : > { %v738_v51 = vsel %vm586_vm2, %v733_v50, 0  ;;  %1677 = vmatmul.mubr.msk.bf16.vlgmr.msra.gmra.mrb[8].mxu1 %vm586_vm2, %v2103_v48 }
 0x179   : > { %1687 = vmatpush3.bf16.xpose.msra.mxu1 %v738_v51  ;;  %1688 = vmatprep.mubr.msk.bf16.mxu1 %vm1921_vm0, %v1920_v1 }
 0x17a   : > { %1698 = vmatprep.subr.bf16.mxu1 %v1920_v1 }
 0x17c   : > { %1683 = vmatmul.mubr.msk.bf16.vlgmr.msra.gmra.mrb[12].mxu0 %vm586_vm2, %v2111_v52 }
 0x17d   : > { %1694 = vmatprep.mubr.msk.bf16.mxu0 %vm1921_vm0, %v1920_v1 }
 0x180   : > { %1689 = vmatmul.mubr.msk.bf16.vlgmr.msra.gmra.mrb[12].mxu1 %vm586_vm2, %v2118_v54 }
 0x181   : > { %1700 = vmatprep.mubr.msk.bf16.mxu1 %vm1921_vm0, %v1920_v1 }
 0x247   : > { %v2124_v55 = vpop.f32.mrb[8].mxu0 }
 0x248   : > { %v1672_v56 = vpop.f32.mrb[9].mxu0  ;;  %v782_v57 = vsel %vm586_vm2, %v2124_v55, -inf }
 0x249   : > { %783 = vmax.xlane.f32.xlu0 %v782_v57  ;;  %v630_v58 = vpop.f32.mrb[10].mxu0 }
 0x24a   : > { %v1673_v59 = vpop.f32.mrb[11].mxu0 }
 0x24b   : > { %v2128_v60 = vpop.f32.mrb[8].mxu1 }
 0x24c   : > { %v1678_v61 = vpop.f32.mrb[9].mxu1  ;;  %v785_v62 = vsel %vm586_vm2, %v2128_v60, -inf }
 0x24d   : > { %v679_v63 = vpop.f32.mrb[10].mxu1  ;;  %786 = vmax.xlane.f32.xlu1 %v785_v62 }
 0x24e   : > { %v1679_v0 = vpop.f32.mrb[11].mxu1 }
 0x24f   : > { %v2132_v2 = vpop.f32.mrb[12].mxu0 }
 0x250   : > { %v1684_v3 = vpop.f32.mrb[13].mxu0  ;;  %v788_v4 = vsel %vm586_vm2, %v2132_v2, -inf }
 0x251   : > { %789 = vmax.xlane.f32.xlu0 %v788_v4  ;;  %v728_v5 = vpop.f32.mrb[14].mxu0 }
 0x252   : > { %v1685_v7 = vpop.f32.mrb[15].mxu0 }
 0x253   : > { %v2136_v8 = vpop.f32.mrb[12].mxu1 }
 0x254   : > { %v1690_v9 = vpop.f32.mrb[13].mxu1  ;;  %v791_v10 = vsel %vm586_vm2, %v2136_v8, -inf }
 0x255   : > { %v777_v11 = vpop.f32.mrb[14].mxu1  ;;  %792 = vmax.xlane.f32.xlu0 %v791_v10 }
 0x256   : > { %v1691_v12 = vpop.f32.mrb[15].mxu1 }
 0x2d6   : > { %v784_v15 = vpop.xlane.xlu0 %783 }
 0x2d7   : > { %vm794_vm3 = vcmp.eq.f32.partialorder %v2124_v55, %v784_v15 }
 0x2d8   : > { %v798_v16 = vsel %vm794_vm3, %v2140_v14, 8 }
 0x2d9   : > { %v802_v17 = vsel %vm586_vm2, %v798_v16, 2147483647 }
 0x2da   : > { %v787_v18 = vpop.xlane.xlu1 %786  ;;  %v804_v19 = vshra.s32 %v802_v17, 16  ;;  %v803_v35 = vand.u32 65535, %v802_v17 }
 0x2db   : > { %vm795_vm4 = vcmp.eq.f32.partialorder %v2128_v60, %v787_v18 }
 0x2dc   : > { %v799_v20 = vsel %vm795_vm4, %v2140_v14, 8  ;;  %v806_v21 = vcvt.s32.f32 %v804_v19  ;;  %v805_v37 = vcvt.s32.f32 %v803_v35 }
 0x2dd   : > { %v817_v22 = vsel %vm586_vm2, %v799_v20, 2147483647 }
 0x2de   : > { %807 = vmin.xlane.f32.xlu1 %v806_v21  ;;  %v790_v23 = vpop.xlane.xlu0 %789  ;;  %v819_v24 = vshra.s32 %v817_v22, 16  ;;  %v818_v38 = vand.u32 65535, %v817_v22 }
 0x2df   : > { %vm796_vm5 = vcmp.eq.f32.partialorder %v2132_v2, %v790_v23 }
 0x2e0   : > { %v800_v25 = vsel %vm796_vm5, %v2140_v14, 8  ;;  %v821_v26 = vcvt.s32.f32 %v819_v24  ;;  %v820_v41 = vcvt.s32.f32 %v818_v38 }
 0x2e1   : > { %v832_v27 = vsel %vm586_vm2, %v800_v25, 2147483647 }
 0x2e2   : > { %822 = vmin.xlane.f32.xlu0 %v821_v26  ;;  %v793_v28 = vpop.xlane.xlu0 %792  ;;  %v834_v29 = vshra.s32 %v832_v27, 16  ;;  %v833_v42 = vand.u32 65535, %v832_v27 }
 0x2e3   : > { %vm797_vm6 = vcmp.eq.f32.partialorder %v2136_v8, %v793_v28 }
 0x2e4   : > { %v801_v30 = vsel %vm797_vm6, %v2140_v14, 8  ;;  %v836_v31 = vcvt.s32.f32 %v834_v29  ;;  %v835_v46 = vcvt.s32.f32 %v833_v42  ;;  %vm952_vm6 = vcmask 1043456  }
 0x2e5   : > { %v847_v32 = vsel %vm586_vm2, %v801_v30, 2147483647 }
 0x2e6   : > { %837 = vmin.xlane.f32.xlu1 %v836_v31  ;;  %v849_v33 = vshra.s32 %v847_v32, 16  ;;  %v848_v47 = vand.u32 65535, %v847_v32 }
 0x2e8   : > { %v851_v34 = vcvt.s32.f32 %v849_v33  ;;  %v850_v51 = vcvt.s32.f32 %v848_v47 }
 0x2ea   : > { %852 = vmin.xlane.f32.xlu0 %v851_v34 }
 0x36b   : > { %v808_v36 = vpop.xlane.xlu1 %807 }
 0x36c   : > { %vm809_vm7 = vcmp.eq.f32.partialorder %v806_v21, %v808_v36  ;;  %v814_v56 = vcvt.f32.s32 %v808_v36 }
 0x36d   : > { %v810_v39 = vsel %vm809_vm7, %v805_v37, inf }
 0x36e   : > { %811 = vmin.xlane.f32.xlu1 %v810_v39  ;;  %v815_v58 = vshll.u32 %v814_v56, 16 }
 0x36f   : > { %v823_v40 = vpop.xlane.xlu0 %822 }
 0x370   : > { %vm824_vm8 = vcmp.eq.f32.partialorder %v821_v26, %v823_v40  ;;  %v829_v59 = vcvt.f32.s32 %v823_v40 }
 0x371   : > { %v825_v43 = vsel %vm824_vm8, %v820_v41, inf }
 0x372   : > { %826 = vmin.xlane.f32.xlu0 %v825_v43  ;;  %v830_v0 = vshll.u32 %v829_v59, 16 }
 0x373   : > { %v838_v45 = vpop.xlane.xlu1 %837 }
 0x374   : > { %vm839_vm9 = vcmp.eq.f32.partialorder %v836_v31, %v838_v45  ;;  %v844_v3 = vcvt.f32.s32 %v838_v45 }
 0x375   : > { %v840_v49 = vsel %vm839_vm9, %v835_v46, inf }
 0x376   : > { %841 = vmin.xlane.f32.xlu1 %v840_v49  ;;  %v845_v11 = vshll.u32 %v844_v3, 16 }
 0x377   : > { %v853_v50 = vpop.xlane.xlu0 %852 }
 0x378   : > { %vm854_vm10 = vcmp.eq.f32.partialorder %v851_v34, %v853_v50  ;;  %v859_v12 = vcvt.f32.s32 %v853_v50 }
 0x379   : > { %v855_v53 = vsel %vm854_vm10, %v850_v51, inf }
 0x37a   : > { %856 = vmin.xlane.f32.xlu0 %v855_v53  ;;  %v860_v19 = vshll.u32 %v859_v12, 16 }
 0x3fb   : > { %v812_v57 = vpop.xlane.xlu1 %811 }
 0x3fc   : > { %v813_v61 = vcvt.f32.s32 %v812_v57 }
 0x3fe   : > { %v816_v62 = vadd.s32 %v815_v58, %v813_v61 }
 0x3ff   : > { %v827_v63 = vpop.xlane.xlu0 %826 }
 0x400   : > { %v828_v4 = vcvt.f32.s32 %v827_v63  ;;  %vm862_vm11 = vcmp.eq.s32.totalorder %v2140_v14, %v816_v62 }
 0x401   : > { %v866_v5 = vsel %vm862_vm11, -inf, %v2124_v55 }
 0x402   : > { %v831_v7 = vadd.s32 %v830_v0, %v828_v4  ;;  %v870_v9 = vsel %vm586_vm2, %v866_v5, -inf }
 0x403   : > { %871 = vmax.xlane.f32.xlu1 %v870_v9  ;;  %v842_v10 = vpop.xlane.xlu1 %841 }
 0x404   : > { %v843_v13 = vcvt.f32.s32 %v842_v10  ;;  %vm863_vm12 = vcmp.eq.s32.totalorder %v2140_v14, %v831_v7 }
 0x405   : > { %v867_v15 = vsel %vm863_vm12, -inf, %v2128_v60 }
 0x406   : > { %v846_v16 = vadd.s32 %v845_v11, %v843_v13  ;;  %v873_v17 = vsel %vm586_vm2, %v867_v15, -inf }
 0x407   : > { %874 = vmax.xlane.f32.xlu0 %v873_v17  ;;  %v857_v18 = vpop.xlane.xlu0 %856 }
 0x408   : > { %v858_v20 = vcvt.f32.s32 %v857_v18  ;;  %vm864_vm13 = vcmp.eq.s32.totalorder %v2140_v14, %v846_v16 }
 0x409   : > { %v868_v21 = vsel %vm864_vm13, -inf, %v2132_v2 }
 0x40a   : > { %v861_v22 = vadd.s32 %v860_v19, %v858_v20  ;;  %v876_v23 = vsel %vm586_vm2, %v868_v21, -inf }
 0x40b   : > { %877 = vmax.xlane.f32.xlu1 %v876_v23 }
 0x40c   : > { %vm865_vm14 = vcmp.eq.s32.totalorder %v2140_v14, %v861_v22 }
 0x40d   : > { %v869_v24 = vsel %vm865_vm14, -inf, %v2136_v8 }
 0x40e   : > { %v879_v25 = vsel %vm586_vm2, %v869_v24, -inf  ;;  %v1144_v24 = vld [vmem:[%s2353_s3] sm:$0xf] }
 0x40f   : > { %880 = vmax.xlane.f32.xlu0 %v879_v25  ;;  %v1198_v25 = vsel %vm952_vm6, %v1144_v24, 0 }
 0x490   : > { %v872_v26 = vpop.xlane.xlu1 %871 }
 0x491   : > { %vm882_vm15 = vcmp.lt.f32.partialorder %v2124_v55, %v872_v26  ;;  %v1577_v26 = vld [vmem:[%s2353_s3 + $0x4] sm:$0xf] }
 0x492   : > { %v886_v27 = vsel %vm882_vm15, -inf, %v2124_v55 }
 0x493   : > { %v890_v28 = vmul.f32 0.35355338, %v886_v27  ;;  %v1152_v27 = vsel %vm952_vm6, %v1577_v26, 0 }
 0x494   : > { %v875_v29 = vpop.xlane.xlu0 %874 }
 0x495   : > { %vm883_vm3 = vcmp.lt.f32.partialorder %v2128_v60, %v875_v29  ;;  %v894_v30 = vsel %vm586_vm2, %v890_v28, -inf }
 0x496   : > { %v887_v31 = vsel %vm883_vm3, -inf, %v2128_v60  ;;  %895 = vmax.xlane.f32.xlu1 %v894_v30 }
 0x497   : > { %v891_v14 = vmul.f32 0.35355338, %v887_v31 }
 0x498   : > { %v878_v32 = vpop.xlane.xlu1 %877 }
 0x499   : > { %vm884_vm4 = vcmp.lt.f32.partialorder %v2132_v2, %v878_v32  ;;  %v897_v33 = vsel %vm586_vm2, %v891_v14, -inf }
 0x49a   : > { %v888_v34 = vsel %vm884_vm4, -inf, %v2132_v2  ;;  %898 = vmax.xlane.f32.xlu0 %v897_v33 }
 0x49b   : > { %v892_v35 = vmul.f32 0.35355338, %v888_v34  ;;  %v1580_v34 = vld [vmem:[%s2353_s3 + $0x8] sm:$0xf] }
 0x49c   : > { %v881_v55 = vpop.xlane.xlu0 %880 }
 0x49d   : > { %vm885_vm5 = vcmp.lt.f32.partialorder %v2136_v8, %v881_v55  ;;  %v900_v36 = vsel %vm586_vm2, %v892_v35, -inf }
 0x49e   : > { %v889_v37 = vsel %vm885_vm5, -inf, %v2136_v8  ;;  %901 = vmax.xlane.f32.xlu1 %v900_v36 }
 0x49f   : > { %v893_v60 = vmul.f32 0.35355338, %v889_v37  ;;  %v1247_v37 = vsel %vm952_vm6, %v1580_v34, 0 }
 0x4a1   : > { %v903_v38 = vsel %vm586_vm2, %v893_v60, -inf }
 0x4a2   : > { %904 = vmax.xlane.f32.xlu0 %v903_v38 }
 0x4af   : > { %947 = vrot.lane.b32.xlu1 %v2095_v44, %s1923_s21 }
 0x523   : > { %v896_v39 = vpop.xlane.xlu1 %895 }
 0x524   : > { %v906_v2 = vsub.f32 %v890_v28, %v896_v39  ;;  %v1582_v28 = vld [vmem:[%s2353_s3 + $0xc] sm:$0xf] }
 0x526   : > { %v910_v40 = vmul.f32 1.442695, %v906_v2 }
 0x527   : > { %v899_v41 = vpop.xlane.xlu0 %898 }
 0x528   : > { %1808 = vpow2.f32 %v910_v40  ;;  %v907_v42 = vsub.f32 %v891_v14, %v899_v41  ;;  %v1297_v14 = vsel %vm952_vm6, %v1582_v28, 0 }
 0x52a   : > { %v912_v43 = vmul.f32 1.442695, %v907_v42 }
 0x52b   : > { %v902_v45 = vpop.xlane.xlu1 %901 }
 0x52c   : > { %1810 = vpow2.f32 %v912_v43  ;;  %v908_v46 = vsub.f32 %v892_v35, %v902_v45 }
 0x52e   : > { %v914_v8 = vmul.f32 1.442695, %v908_v46 }
 0x52f   : > { %v948_v47 = vpop.permute.xlu1 %947  ;;  %v905_v49 = vpop.xlane.xlu0 %904 }
 0x530   : > { %1812 = vpow2.f32 %v914_v8  ;;  %v954_v50 = vsel %vm952_vm6, %v948_v47, 0  ;;  %v909_v51 = vsub.f32 %v893_v60, %v905_v49  ;;  %v1806_v49 = vld [vmem:[%s2355_s5] sm:$0xff]  }
 0x531   : > { %1693 = vmatpush3.bf16.msra.mxu0 %v954_v50  ;;  %v1807_v50 = vld [vmem:[%s2355_s5 + $0x8] sm:$0xff]  }
 0x532   : > { %v1809_v44 = vpop.eup %1808  ;;  %v916_v53 = vmul.f32 1.442695, %v909_v51  ;;  %1704 = vmatprep.subr.bf16.mxu0 %v1920_v1 }
 0x533   : > { %v918_v56 = vsel %vm586_vm2, %v1809_v44, 0.0 }
 0x534   : > { %1814 = vpow2.f32 %v916_v53  ;;  %919 = vadd.xlane.f32.xlu1 %v918_v56 }
 0x536   : > { %v1811_v57 = vpop.eup %1810 }
 0x537   : > { %v921_v58 = vsel %vm586_vm2, %v1811_v57, 0.0 }
 0x538   : > { %922 = vadd.xlane.f32.xlu0 %v921_v58 }
 0x53a   : > { %v1813_v59 = vpop.eup %1812 }
 0x53b   : > { %v924_v61 = vsel %vm586_vm2, %v1813_v59, 0.0 }
 0x53c   : > { %925 = vadd.xlane.f32.xlu1 %v924_v61 }
 0x53e   : > { %v1815_v62 = vpop.eup %1814 }
 0x53f   : > { %v927_v63 = vsel %vm586_vm2, %v1815_v62, 0.0 }
 0x540   : > { %928 = vadd.xlane.f32.xlu0 %v927_v63 }
 0x54d   : > { %1046 = vrot.lane.b32.xlu1 %v2111_v52, %s1923_s21 }
 0x551   : > { %1095 = vrot.lane.b32.xlu1 %v2118_v54, %s1923_s21 }
 0x556   : > { %997 = vrot.lane.b32.xlu0 %v2103_v48, %s1923_s21  ;;  %s1824_s21 = scalar_lea.vmem %s2267_s12, 512 }
 0x557   : > { %p1825_p11 = scmp.ne.s32.totalorder %s2267_s12, %s1824_s21 }
 0x559   : > { %p1826_p12 = pnand %p1825_p11, %p2011_p5 }
 0x55b   : > { %p1827_p13 = pneg %p1826_p12 }
 0x5c1   : > { %v920_v0 = vpop.xlane.xlu1 %919 }
 0x5c2   : > { %1816 = vrcp.f32 %v920_v0 }
 0x5c5   : > { %v923_v3 = vpop.xlane.xlu0 %922 }
 0x5c6   : > { %1818 = vrcp.f32 %v923_v3 }
 0x5c9   : > { %v926_v4 = vpop.xlane.xlu1 %925 }
 0x5ca   : > { %1820 = vrcp.f32 %v926_v4 }
 0x5cc   : > { %v1817_v5 = vpop.eup %1816 }
 0x5cd   : > { %v934_v7 = vmul.f32 %v1817_v5, %v1809_v44  ;;  %v1047_v9 = vpop.permute.xlu1 %1046  ;;  %v929_v52 = vpop.xlane.xlu0 %928  ;;  %v1584_v5 = vld [vmem:[%s2354_s4] ss:$0 sm:$0xff] }
 0x5ce   : > { %1822 = vrcp.f32 %v929_v52  ;;  %v1052_v11 = vsel %vm952_vm6, %v1047_v9, 0 }
 0x5cf   : > { %v942_v10 = vpack.c.bf16 %v934_v7, %v934_v7  ;;  %938 = vst.msk [vmem:[%s2196_s24] sm:$0xff] %vm586_vm2, %v934_v7 }
 0x5d0   : > { %v1819_v48 = vpop.eup %1818 }
 0x5d1   : > { %v935_v54 = vmul.f32 %v1819_v48, %v1811_v57  ;;  %1695 = vmatmul.mubr.msk.bf16.vlgmr.msra.gmra.mrb[16].mxu0 %vm586_vm2, %v942_v10  ;;  %v998_v12 = vpop.permute.xlu0 %997  ;;  %v1096_v15 = vpop.permute.xlu1 %1095 }
 0x5d2   : > { %1705 = vmatpush3.bf16.msra.mxu0 %v1052_v11  ;;  %v1003_v13 = vsel %vm952_vm6, %v998_v12, 0  ;;  %1706 = vmatprep.mubr.msk.bf16.mxu0 %vm1921_vm0, %v1920_v1  ;;  %v1101_v19 = vsel %vm952_vm6, %v1096_v15, 0 }
 0x5d3   : > { %1699 = vmatpush3.bf16.msra.mxu1 %v1003_v13  ;;  %v943_v16 = vpack.c.bf16 %v935_v54, %v935_v54  ;;  %1716 = vmatprep.subr.bf16.mxu0 %v1920_v1  ;;  %939 = vst.msk [vmem:[%s2196_s24 + $0x8] sm:$0xff] %vm586_vm2, %v935_v54 }
 0x5d4   : > { %v1821_v17 = vpop.eup %1820  ;;  %1710 = vmatprep.subr.bf16.mxu1 %v1920_v1 }
 0x5d5   : > { %v936_v18 = vmul.f32 %v1821_v17, %v1813_v59 }
 0x5d6   : > { %1701 = vmatmul.mubr.msk.bf16.vlgmr.msra.gmra.mrb[16].mxu1 %vm586_vm2, %v943_v16 }
 0x5d7   : > { %1711 = vmatpush3.bf16.msra.mxu1 %v1101_v19  ;;  %v944_v20 = vpack.c.bf16 %v936_v18, %v936_v18  ;;  %1712 = vmatprep.mubr.msk.bf16.mxu1 %vm1921_vm0, %v1920_v1  ;;  %940 = vst.msk [vmem:[%s2196_s24 + $0x10] sm:$0xff] %vm586_vm2, %v936_v18 }
 0x5d8   : > { %v1823_v21 = vpop.eup %1822  ;;  %1722 = vmatprep.subr.bf16.mxu1 %v1920_v1 }
 0x5d9   : > { %v937_v22 = vmul.f32 %v1823_v21, %v1815_v62  ;;  %1707 = vmatmul.mubr.msk.bf16.vlgmr.msra.gmra.mrb[20].mxu0 %vm586_vm2, %v944_v20 }
 0x5da   : > { %1718 = vmatprep.mubr.msk.bf16.mxu0 %vm1921_vm0, %v1920_v1  ;;  %1717 = vmatpush3.bf16.msra.mxu0 %v1152_v27 }
 0x5db   : > { %v945_v23 = vpack.c.bf16 %v937_v22, %v937_v22  ;;  %941 = vst.msk [vmem:[%s2196_s24 + $0x18] sm:$0xff] %vm586_vm2, %v937_v22  ;;  %1728 = vmatprep.subr.bf16.mxu0 %v1920_v1  ;;  %s1830_s24 = scalar_lea.vmem %s1829_s25, 1024 }
 0x5dc   : > { %p1832_p1 = scmp.lt.s32.totalorder %s1830_s24, %s1824_s21 }
 0x5de   : > { %1713 = vmatmul.mubr.msk.bf16.vlgmr.msra.gmra.mrb[20].mxu1 %vm586_vm2, %v945_v23  ;;  %p1833_p2 = por %p1832_p1, %p1831_p0 }
 0x5df   : > { %1724 = vmatprep.mubr.msk.bf16.mxu1 %vm1921_vm0, %v1920_v1  ;;  %1723 = vmatpush3.bf16.msra.mxu1 %v1198_v25 }
 0x5e0   : > { %1734 = vmatprep.subr.bf16.mxu1 %v1920_v1  ;;  %p1834_p3 = pnand %p1833_p2, %p1827_p13 }
 0x6a4   : > { %v990_v29 = vpop.f32.mrb[16].mxu0 }
 0x6a5   : > { %v1143_v30 = vpack.c.bf16 %v990_v29, %v990_v29  ;;  %v1696_v31 = vpop.f32.mrb[17].mxu0 }
 0x6a6   : > { %v993_v32 = vpop.f32.mrb[18].mxu0 }
 0x6a7   : > { %v1697_v33 = vpop.f32.mrb[19].mxu0  ;;  %1725 = vmatmul.mubr.msk.bf16.vlgmr.msra.gmra.mrb[24].mxu1 %vm586_vm2, %v1143_v30 }
 0x6a8   : > { %1735 = vmatpush3.bf16.msra.mxu1 %v1297_v14  ;;  %1736 = vmatprep.mubr.msk.bf16.mxu1 %vm1921_vm0, %v1920_v1 }
 0x6a9   : > { %v1039_v35 = vpop.f32.mrb[16].mxu1 }
 0x6aa   : > { %v1145_v55 = vpack.c.bf16 %v1039_v35, %v1039_v35  ;;  %v1702_v36 = vpop.f32.mrb[17].mxu1 }
 0x6ab   : > { %v1042_v60 = vpop.f32.mrb[18].mxu1 }
 0x6ac   : > { %v1703_v38 = vpop.f32.mrb[19].mxu1  ;;  %v1088_v39 = vpop.f32.mrb[20].mxu0  ;;  %1719 = vmatmul.mubr.msk.bf16.vlgmr.msra.gmra.mrb[24].mxu0 %vm586_vm2, %v1145_v55 }
 0x6ad   : > { %v1708_v2 = vpop.f32.mrb[21].mxu0  ;;  %1729 = vmatpush3.bf16.msra.mxu0 %v1247_v37  ;;  %1730 = vmatprep.mubr.msk.bf16.mxu0 %vm1921_vm0, %v1920_v1  ;;  %v1240_v43 = vpack.c.bf16 %v1088_v39, %v1088_v39 }
 0x6ae   : > { %v1091_v40 = vpop.f32.mrb[22].mxu0  ;;  %1740 = vmatprep.subr.bf16.mxu0 %v1920_v1 }
 0x6af   : > { %v1709_v41 = vpop.f32.mrb[23].mxu0 }
 0x6b1   : > { %v1137_v42 = vpop.f32.mrb[20].mxu1 }
 0x6b2   : > { %v1290_v45 = vpack.c.bf16 %v1137_v42, %v1137_v42  ;;  %v1714_v46 = vpop.f32.mrb[21].mxu1 }
 0x6b3   : > { %v1140_v8 = vpop.f32.mrb[22].mxu1 }
 0x6b4   : > { %v1715_v47 = vpop.f32.mrb[23].mxu1  ;;  %1731 = vmatmul.mubr.msk.bf16.vlgmr.msra.gmra.mrb[28].mxu0 %vm586_vm2, %v1240_v43  ;;  %1737 = vmatmul.mubr.msk.bf16.vlgmr.msra.gmra.mrb[28].mxu1 %vm586_vm2, %v1290_v45 }
 0x6b5   : > { %1744 = vmatprep.mubr.msk.bf16.mxu0 %vm1921_vm0, %v1920_v1  ;;  %1741 = vmatpush3.bf16.msra.mxu0 %v1806_v49 }
 0x6b6   : > { %1742 = vmatprep.subr.bf16.mxu0 %v1920_v1 }
 0x6b9   : > { %1743 = vmatpush3.bf16.msra.mxu0 %v1807_v50 }
 0x77a   : > { %v1234_v51 = vpop.f32.mrb[24].mxu1 }
 0x77b   : > { %v1726_v44 = vpop.f32.mrb[25].mxu1 }
 0x77c   : > { %v1237_v53 = vpop.f32.mrb[26].mxu1 }
 0x77d   : > { %v1727_v56 = vpop.f32.mrb[27].mxu1 }
 0x77f   : > { %v1188_v57 = vpop.f32.mrb[24].mxu0 }
 0x780   : > { %v1235_v58 = vadd.f32 %v1234_v51, %v1188_v57  ;;  %v1720_v59 = vpop.f32.mrb[25].mxu0 }
 0x781   : > { %v1191_v61 = vpop.f32.mrb[26].mxu0 }
 0x782   : > { %v1721_v62 = vpop.f32.mrb[27].mxu0 }
 0x787   : > { %v1283_v63 = vpop.f32.mrb[28].mxu0  ;;  %v1333_v0 = vpop.f32.mrb[28].mxu1 }
 0x788   : > { %v1289_v3 = vadd.f32 %v1283_v63, %v1235_v58  ;;  %v1732_v4 = vpop.f32.mrb[29].mxu0  ;;  %v1738_v1 = vpop.f32.mrb[29].mxu1 }
 0x789   : > { %v1286_v7 = vpop.f32.mrb[30].mxu0  ;;  %v1336_v9 = vpop.f32.mrb[30].mxu1 }
 0x78a   : > { %v1339_v52 = vadd.f32 %v1333_v0, %v1289_v3  ;;  %v1733_v10 = vpop.f32.mrb[31].mxu0  ;;  %v1739_v48 = vpop.f32.mrb[31].mxu1 }
 0x78c   : > { %v1347_v54 = vadd.f32 %v1584_v5, %v1339_v52 }
 0x78e   : > { %v1348_v11 = vadd.f32 %v1347_v54, %v2050_v6 }
 0x790   : > { %vm1349_vm0 = vcmp.gt.f32.partialorder %v1348_v11, 0.0  ;;  %v1350_v12 = vmul.f32 0.5, %v1348_v11 }
 0x792   : > { %v1351_v13 = vsel %vm1349_vm0, %v1348_v11, %v1350_v12 }
 0x793   : > { %v1356_v15 = vpack.c.bf16 %v1351_v13, %v1351_v13 }
 0x795   : > { %1745 = vmatmul.mubr.msk.bf16.vlgmr.msra.gmra.mrb[32].mxu0 %vm371_vm1, %v1356_v15 }
 0x796   : > { %1837 = shalt.err (!%p1834_p3)
}
 0x797   : > { %s1838_s26 = scalar_lea.hbm %s2272_s19, 512  ;;  %s1842_s17 = scalar_lea.hbm %s2358_s8, 1024 }
 0x798   : > { %p1839_p4 = scmp.ne.s32.totalorder %s2272_s19, %s1838_s26  ;;  %p1843_p9 = scmp.lt.u32.totalorder %s2272_s19, %s2358_s8 }
 0x799   : > { %p1844_p10 = scmp.lt.u32.totalorder %s1842_s17, %s1838_s26  ;;  %p1846_p12 = scmp.lt.u32.totalorder %s1838_s26, %s2272_s19 }
 0x79a   : > { %p1840_p7 = pnand %p1839_p4, %p2011_p5 }
 0x79b   : > { %p1845_p11 = por %p1844_p10, %p1843_p9 }
 0x79c   : > { %p1841_p8 = pneg %p1840_p7 }
 0x79d   : > { %p1847_p13 = por %p1846_p12, %p1845_p11 }
 0x79f   : > { %p1848_p0 = pnand %p1847_p13, %p1841_p8 }
 0x7a1   : > { %1851 = shalt.err (!%p1848_p0)
}
 0x7a2   : > { %s1925_s21 = smov 128   ;;  %s1926_s25 = smov 8   ;;  %v1585_v6 = vld [vmem:[%s2356_s6] ss:$0 sm:$0xff] }
 0x7a3   : > { %1749 = dma.vmem_to_hbm [thread:$0]  (%p2011_p5), %s2267_s12, 512, %s2272_s19, %s1426_s20, %s1925_s21, %s1925_s21, %s1926_s25  }
 0x7a4   : > { %s1550_s24 = sshll.u32 %s2193_s22, 3  ;;  %s1591_s26 = sshll.u32 %s1994_s9, 7 }
 0x7a5   : > { %s300_s17 = scalar_lea.vmem [#allocation2], %s1550_s24  ;;  %s2306_s1 = scalar_lea.hbm %s2357_s7, %s1591_s26 }
 0x7a6   : > { %s1439_s18 = sshll.u32 %s300_s17, 4  ;;  %s1421_s9 = scalar_lea.sflag [#allocation3], %s2193_s22  ;;  %s2308_s18 = int_to_ptr.vmem [resolvable:$true] %s1439_s18 }
 0x7a7   : > { %s1852_s12 = scalar_lea.vmem %s2308_s18, 128  ;;  %s1927_s19 = smov [#allocation2]  }
 0x7a8   : > { %p1853_p1 = scmp.ne.s32.totalorder %s2308_s18, %s1852_s12  ;;  %s1856_s20 = sshll.u32 %s1927_s19, 4  ;;  %s1857_s20 = int_to_ptr.vmem [resolvable:$false] %s1856_s20 }
 0x7a9   : > { %s1858_s0 = scalar_lea.vmem %s1857_s20, 256  ;;  %p1859_p4 = scmp.lt.s32.totalorder %s2308_s18, %s1857_s20 }
 0x7aa   : > { %p1854_p2 = pnand %p1853_p1, %p2011_p5  ;;  %p1860_p7 = scmp.lt.s32.totalorder %s1858_s0, %s1852_s12 }
 0x7ac   : > { %p1855_p3 = pneg %p1854_p2  ;;  %p1861_p8 = por %p1860_p7, %p1859_p4 }
 0x7ae   : > { %p1862_p9 = pnand %p1861_p8, %p1855_p3 }
 0x868   : > { %v1413_v16 = vpop.f32.mrb[32].mxu0 }
 0x869   : > { %v1414_v17 = vadd.f32 %v1585_v6, %v1413_v16  ;;  %v1746_v18 = vpop.f32.mrb[33].mxu0 }
 0x86a   : > { %v1416_v19 = vpop.f32.mrb[34].mxu0 }
 0x86b   : > { %v1747_v20 = vpop.f32.mrb[35].mxu0  ;;  %1419 = vst.msk [vmem:[%s300_s17] sm:$0xff] %vm371_vm1, %v1414_v17 }
 0x86c   : > { %1865 = shalt.err (!%p1862_p9)
}
 0x86d   : > { %s1866_s22 = scalar_lea.hbm %s2306_s1, 128  ;;  %s1870_s24 = scalar_lea.hbm %s2357_s7, 256 }
 0x86e   : > { %p1867_p10 = scmp.ne.s32.totalorder %s2306_s1, %s1866_s22  ;;  %p1871_p13 = scmp.lt.u32.totalorder %s2306_s1, %s2357_s7 }
 0x86f   : > { %p1872_p0 = scmp.lt.u32.totalorder %s1870_s24, %s1866_s22  ;;  %p1874_p2 = scmp.lt.u32.totalorder %s1866_s22, %s2306_s1 }
 0x870   : > { %p1868_p11 = pnand %p1867_p10, %p2011_p5 }
 0x871   : > { %p1873_p1 = por %p1872_p0, %p1871_p13 }
 0x872   : > { %p1869_p12 = pneg %p1868_p11 }
 0x873   : > { %p1875_p3 = por %p1874_p2, %p1873_p1 }
 0x875   : > { %p1876_p4 = pnand %p1875_p3, %p1869_p12 }
 0x877   : > { %1879 = shalt.err (!%p1876_p4)
}
 0x878   : > { %1748 = dma.vmem_to_hbm [thread:$0]  (%p2011_p5), %s2308_s18, 128, %s2306_s1, %s1421_s9  }
 0x879 PF: > { %p1759_p7 = scmp.ge.s32.totalorder %s1918_s30, 2  ;;  %s1467_s26 = sand.u32 1, %s1906_s27  }
 0x87a   : > { %s1468_s17 = scalar_lea.sflag [#allocation3], %s1467_s26 }
 0x87b   : > { %p1753_p8 = pnand %p1759_p7, %p2015_p6 }
 0x87d   : > { %1897 = dma.done.wait (!%p1753_p8), %s1468_s17, 128  }
 0x87e   : > { %1899 = vsyncadd (!%p1753_p8), %s1468_s17, 4294967168  ;;  %s1477_s23 = scalar_lea.sflag [#allocation5], %s1467_s26 }
 0x87f   : > { %1901 = dma.done.wait (!%p1753_p8), %s1477_s23, 512  }
 0x880   : > { %1903 = vsyncadd (!%p1753_p8), %s1477_s23, 4294966784  ;;  %p22_p5 = scmp.ge.s32.totalorder %s1998_s11, 4   ;;  %s2365_s27 = smov %s1910_s28 }
 0x881   : > { %s2366_s28 = smov %s1914_s29  ;;  %s2367_s29 = smov %s2009_s14 }
 0x882   : > { %s2368_s30 = smov %s1998_s11  ;;  %24 = sbr.rel (!%p22_p5) target bundleno = 8 (0x8), region = 103 }
 0x889   :  { %1482 = vsyncpa [#allocation3], 1 }
 0x88a   :  { %1484 = vsyncpa [#allocation3 + $0x1], 1 }
 0x88b   :  { %1485 = vsyncpa [#allocation5], 1 }
 0x88c   :  { %1487 = vsyncpa [#allocation5 + $0x1], 1 }

</bundles_post_ra>
